<compile_context>
chip_gen: v5e
topology: v5e:2x2
jax: 0.10.0
libtpu: 0.0.40
codegen_flags: <defaults>
</compile_context>

<pallas_src>
import numpy as np
import jax
import jax.numpy as jnp
from jax import lax
from jax.experimental import pallas as pl
from jax.experimental.pallas import tpu as pltpu


def _round_up(x, m):
    return ((x + m - 1) // m) * m


def _pad2(x, rows, cols, value=0):
    r, c = x.shape
    if r == rows and c == cols:
        return x                       # no copy when already aligned
    return jnp.pad(x, ((0, rows - r), (0, cols - c)), constant_values=value)


# ---------------------------------------------------------------------------
# Fused Pallas kernel: one sweep over the memory bank produces
#   raw  (B, N)         : inputs @ features.T                (un-tempered)
#   simT (B, C_lab)     : raw @ one_hot(labels)              (class sums)
#   adt  (B, class_num) : raw @ (one_hot(pred) * [lab >= class_num])
#   ads  (B, class_num) : raw @ (one_hot(pred) * [lab <  class_num])
# ---------------------------------------------------------------------------
def _make_fused_kernel(class_num, tn, cl_pad, cc_pad):
    def kernel(x_ref, feat_ref, lab_ref, pred_ref,
               raw_ref, simT_ref, adt_ref, ads_ref):
        @pl.when(pl.program_id(0) == 0)
        def _init():
            simT_ref[...] = jnp.zeros_like(simT_ref)
            adt_ref[...] = jnp.zeros_like(adt_ref)
            ads_ref[...] = jnp.zeros_like(ads_ref)

        # raw[b, n] = <x_b, feat_n>: bank tile consumed row-major, contraction
        # on the last (feature) axis of both operands -> no bank transpose.
        raw = lax.dot_general(
            x_ref[...], feat_ref[...],
            dimension_numbers=(((1,), (1,)), ((), ())),
            preferred_element_type=jnp.float32)             # (B, tn) f32
        raw_ref[...] = raw

        lab = lab_ref[...]                                   # (tn, 1) int32, -1 = pad
        pred = pred_ref[...]                                 # (tn, 1) int32, -1 = pad
        raw_bf = raw.astype(jnp.bfloat16)

        # sim.index_add_(0, labels, inputs_out.T)  ==  raw @ one_hot(labels)
        iota_cl = lax.broadcasted_iota(jnp.int32, (tn, cl_pad), 1)
        onehot_lab = jnp.where(lab == iota_cl, 1.0, 0.0).astype(jnp.bfloat16)
        simT_ref[...] += jnp.dot(raw_bf, onehot_lab,
                                 preferred_element_type=jnp.float32)

        # per-pred-class prototype sums, split source / target domain
        iota_cc = lax.broadcasted_iota(jnp.int32, (tn, cc_pad), 1)
        onehot_pred = jnp.where(pred == iota_cc, 1.0, 0.0)
        tmask = jnp.where(lab >= class_num, 1.0, 0.0)        # (tn, 1)
        w_t = (onehot_pred * tmask).astype(jnp.bfloat16)
        w_s = (onehot_pred * (1.0 - tmask)).astype(jnp.bfloat16)
        adt_ref[...] += jnp.dot(raw_bf, w_t, preferred_element_type=jnp.float32)
        ads_ref[...] += jnp.dot(raw_bf, w_s, preferred_element_type=jnp.float32)

    return kernel


def pallas_bank_sims(inputs, features, labels, pred_labels, class_num, *, tn=512):
    """One fused bank sweep. Returns (raw, simT, adt, ads) — all un-tempered."""
    inputs = jnp.asarray(inputs)
    features = jnp.asarray(features)
    labels = jnp.asarray(labels, jnp.int32)
    pred_labels = jnp.asarray(pred_labels, jnp.int32)
    B, F = inputs.shape
    N, F2 = features.shape
    assert F == F2
    # TODO(synk): C_lab is read at trace time (labels is a persistent buffer),
    #             so the forward cannot be jitted with a traced labels array.
    C_lab = int(np.asarray(labels).max()) + 1

    Bp = _round_up(B, 8)
    Fp = _round_up(F, 128)                 # K collapsed into a single step
    tn = max(128, min(tn, _round_up(N, 128)))
    Np = _round_up(N, tn)
    CLp = _round_up(C_lab, 128)
    CCp = _round_up(class_num, 128)

    # bf16 operands (f32 accumulation on the MXU).  In production keep the
    # persistent bank pre-cast / pre-padded so these are no-ops per call.
    x_p = _pad2(inputs.astype(jnp.bfloat16), Bp, Fp)
    f_p = _pad2(features.astype(jnp.bfloat16), Np, Fp)
    lab_p = _pad2(labels.reshape(N, 1), Np, 1, value=-1)
    pred_p = _pad2(pred_labels.reshape(N, 1), Np, 1, value=-1)

    kernel = _make_fused_kernel(class_num, tn, CLp, CCp)
    raw, simT, adt, ads = pl.pallas_call(
        kernel,
        out_shape=(jax.ShapeDtypeStruct((Bp, Np), jnp.float32),
                   jax.ShapeDtypeStruct((Bp, CLp), jnp.float32),
                   jax.ShapeDtypeStruct((Bp, CCp), jnp.float32),
                   jax.ShapeDtypeStruct((Bp, CCp), jnp.float32)),
        grid_spec=pltpu.PrefetchScalarGridSpec(
            num_scalar_prefetch=0,
            grid=(Np // tn,),
            in_specs=[pl.BlockSpec((Bp, Fp), lambda i: (0, 0)),   # inputs (resident)
                      pl.BlockSpec((tn, Fp), lambda i: (i, 0)),   # bank tile
                      pl.BlockSpec((tn, 1), lambda i: (i, 0)),    # labels tile
                      pl.BlockSpec((tn, 1), lambda i: (i, 0))],   # pred labels tile
            out_specs=[pl.BlockSpec((Bp, tn), lambda i: (0, i)),  # raw (lane-dense)
                       pl.BlockSpec((Bp, CLp), lambda i: (0, 0)),  # resident accumulators
                       pl.BlockSpec((Bp, CCp), lambda i: (0, 0)),
                       pl.BlockSpec((Bp, CCp), lambda i: (0, 0))],
        ),
        compiler_params=pltpu.CompilerParams(
            dimension_semantics=("arbitrary",)),
    )(x_p, f_p, lab_p, pred_p)

    return (raw[:B, :N], simT[:B, :C_lab],
            adt[:B, :class_num], ads[:B, :class_num])


def ref_bank_sims(inputs, features, labels, pred_labels, class_num):
    """Pure-JAX reference of the exact same math (same bf16 quantization)."""
    f32 = jnp.float32
    hi = lax.Precision.HIGHEST
    x = jnp.asarray(inputs, f32).astype(jnp.bfloat16).astype(f32)
    f = jnp.asarray(features, f32).astype(jnp.bfloat16).astype(f32)
    labels = jnp.asarray(labels, jnp.int32)
    pred_labels = jnp.asarray(pred_labels, jnp.int32)
    C_lab = int(np.asarray(labels).max()) + 1
    raw = lax.dot(x, f.T, precision=hi)
    raw_q = raw.astype(jnp.bfloat16).astype(f32)
    onehot_lab = jax.nn.one_hot(labels, C_lab, dtype=f32)
    simT = lax.dot(raw_q, onehot_lab, precision=hi)
    onehot_pred = jax.nn.one_hot(pred_labels, class_num, dtype=f32)
    tmask = (labels >= class_num).astype(f32)[:, None]
    adt = lax.dot(raw_q, onehot_pred * tmask, precision=hi)
    ads = lax.dot(raw_q, onehot_pred * (1.0 - tmask), precision=hi)
    return raw, simT, adt, ads


# ---------------------------------------------------------------------------
# MemoryBank.forward
# ---------------------------------------------------------------------------
def memory_bank_forward(inputs, inputs_s, inputs_s1, indexes, features,
                        labels, pred_labels, *, class_num, ad_method="CE",
                        temp=0.05, k=10, bank_sims=pallas_bank_sims):
    inputs = jnp.asarray(inputs, jnp.float32)
    inputs_s = jnp.asarray(inputs_s, jnp.float32)
    inputs_s1 = jnp.asarray(inputs_s1, jnp.float32)
    features = jnp.asarray(features, jnp.float32)
    labels_j = jnp.asarray(labels, jnp.int32)
    pred_j = jnp.asarray(pred_labels, jnp.int32)
    idx_j = jnp.asarray(indexes, jnp.int32)
    C_lab = int(np.asarray(labels).max()) + 1      # static (labels is a buffer)
    B = inputs.shape[0]
    inv_temp = 1.0 / temp

    # --- single fused Pallas sweep over the memory bank -----------------------
    # NOTE: the MB.backward momentum update of the bank is not part of forward.
    raw, sim_sum, adt_sum, ads_sum = bank_sims(
        inputs, features, labels_j, pred_j, class_num)

    # --- top-k neighbours: torch.topk + bmm == sum of top-k raw sims
    # TODO(synk): top-k stays in XLA (lax.top_k); only its summed values feed
    #             the loss, which is mathematically identical to the reference.
    topk_vals, _ = lax.top_k(raw, k)
    _local = jnp.sum(topk_vals, axis=-1)                                  # (B,)

    # only the diagonal of (inputs@inputs_s.T + inputs@inputs_s1.T)/2 survives
    # the *eye(B) in the reference, so compute just the row-wise dots.
    diag_local = 0.5 * (jnp.sum(inputs * inputs_s, axis=1)
                        + jnp.sum(inputs * inputs_s1, axis=1))
    diag = (diag_local + _local) * inv_temp                               # (B,)

    targets = labels_j[idx_j]                                             # (B,)

    # sim.index_add_(0, labels, inputs_out.T) fused in-kernel; add the
    # (diagonal) local term and normalize by per-class counts.
    simT = sim_sum * inv_temp
    simT = simT.at[jnp.arange(B), targets].add(diag)

    nums = jnp.zeros((C_lab,), jnp.float32).at[labels_j].add(1.0)
    nums_help = jnp.zeros((C_lab,), jnp.float32).at[targets].add(1.0)
    nums = nums + (nums_help > 0).astype(jnp.float32) * float(k + 1)
    mask = (nums > 0).astype(jnp.float32)
    simT = simT / (mask * nums + (1.0 - mask))[None, :]

    # reference masked_softmax: exp, mask, row-sum + eps, divide (no max trick)
    exps = jnp.exp(simT) * mask[None, :]
    masked_sim = exps / (jnp.sum(exps, axis=1, keepdims=True) + 1e-6)
    loss1 = jnp.mean(-jnp.log(masked_sim[jnp.arange(B), targets] + 1e-6))

    # --- source / target class-prototype alignment ---------------------------
    target_mask = (labels_j >= class_num).astype(jnp.float32)             # (N,)
    t_nums = jnp.zeros((class_num,), jnp.float32).at[pred_j].add(target_mask)
    s_nums = jnp.zeros((class_num,), jnp.float32).at[pred_j].add(1.0 - target_mask)
    ad_sim_target = (adt_sum * inv_temp) / jnp.where(t_nums > 0, t_nums, 1.0)[None, :]
    ad_sim_source = (ads_sum * inv_temp) / jnp.where(s_nums > 0, s_nums, 1.0)[None, :]

    batch_labels = pred_j[idx_j]
    ad_t = ad_sim_target[jnp.arange(B), batch_labels]
    ad_s = ad_sim_source[jnp.arange(B), batch_labels]
    ad_sim = jnp.stack([ad_s, ad_t], axis=1)                              # (B, 2)

    if ad_method == "LMMD":
        batch_mask = target_mask[idx_j]
        batch_help = (-1.0 + 2.0 * batch_mask)[:, None]
        batch_label = jnp.concatenate([-batch_help, batch_help], axis=1)
        loss2 = jnp.mean(jnp.sum(ad_sim * batch_label, axis=1))
    else:
        batch_mask = (targets < class_num).astype(jnp.int32)
        exp_ad = jnp.exp(ad_sim)
        exp_sims = exp_ad / (jnp.sum(exp_ad, axis=1, keepdims=True) + 1e-6)
        loss2 = jnp.mean(-jnp.log(exp_sims[jnp.arange(B), batch_mask] + 1e-6))

    return loss1, loss2


if __name__ == "__main__":
    key = jax.random.PRNGKey(0)
    B, Fdim, N, class_num, k = 8, 32, 64, 5, 10
    k1, k2, k3, k4 = jax.random.split(key, 4)

    def _norm(x):
        return x / jnp.linalg.norm(x, axis=1, keepdims=True)

    inputs = _norm(jax.random.normal(k1, (B, Fdim), jnp.float32))
    inputs_s = _norm(jax.random.normal(k2, (B, Fdim), jnp.float32))
    inputs_s1 = _norm(jax.random.normal(k3, (B, Fdim), jnp.float32))
    features = _norm(jax.random.normal(k4, (N, Fdim), jnp.float32))
    labels = np.concatenate([np.arange(N // 2) % class_num,
                             class_num + np.arange(N - N // 2) % class_num]
                            ).astype(np.int32)
    pred_labels = (np.arange(N) % class_num).astype(np.int32)
    indexes = np.array([3, 10, 21, 33, 40, 47, 55, 60], dtype=np.int32)

    # 1) fused-kernel outputs vs pure-JAX reference of the same math
    p_out = jax.block_until_ready(
        pallas_bank_sims(inputs, features, labels, pred_labels, class_num))
    r_out = jax.block_until_ready(
        ref_bank_sims(inputs, features, labels, pred_labels, class_num))
    for p, r in zip(p_out, r_out):
        assert np.allclose(np.asarray(p), np.asarray(r), rtol=1e-3, atol=1e-3), \
            float(np.max(np.abs(np.asarray(p) - np.asarray(r))))

    # 2) end-to-end forward (CE branch): Pallas path vs reference path
    loss1, loss2 = memory_bank_forward(
        inputs, inputs_s, inputs_s1, indexes, features, labels, pred_labels,
        class_num=class_num, ad_method="CE", temp=0.05, k=k,
        bank_sims=pallas_bank_sims)
    jax.block_until_ready((loss1, loss2))
    r1, r2 = memory_bank_forward(
        inputs, inputs_s, inputs_s1, indexes, features, labels, pred_labels,
        class_num=class_num, ad_method="CE", temp=0.05, k=k,
        bank_sims=ref_bank_sims)
    jax.block_until_ready((r1, r2))
    assert np.allclose(float(loss1), float(r1), rtol=1e-2, atol=1e-2), (loss1, r1)
    assert np.allclose(float(loss2), float(r2), rtol=1e-2, atol=1e-2), (loss2, r2)

    # 3) LMMD branch smoke-test through the Pallas path
    l1_lmmd, l2_lmmd = memory_bank_forward(
        inputs, inputs_s, inputs_s1, indexes, features, labels, pred_labels,
        class_num=class_num, ad_method="LMMD", temp=0.05, k=k,
        bank_sims=pallas_bank_sims)
    jax.block_until_ready((l1_lmmd, l2_lmmd))

    print("KERNEL_OK")
</pallas_src>

<mosaic_0001>
module attributes {stable_mosaic.version = 11 : i64} {
  func.func @kernel(%arg0: i32, %arg1: memref<8x128xbf16, #tpu.memory_space<vmem>>, %arg2: memref<128x128xbf16, #tpu.memory_space<vmem>>, %arg3: memref<128x1xi32, #tpu.memory_space<vmem>>, %arg4: memref<128x1xi32, #tpu.memory_space<vmem>>, %arg5: memref<8x128xf32, #tpu.memory_space<vmem>>, %arg6: memref<8x128xf32, #tpu.memory_space<vmem>>, %arg7: memref<8x128xf32, #tpu.memory_space<vmem>>, %arg8: memref<8x128xf32, #tpu.memory_space<vmem>>) attributes {dimension_semantics = [#tpu.dimension_semantics<arbitrary>], iteration_bounds = array<i64: 1>, scalar_prefetch = 0 : i64, scratch_operands = 0 : i64, tpu.core_type = #tpu.core_type<tc>, window_params = [{pipeline_mode = #tpu.pipeline_mode<synchronous>, transform_indices = @transform_0, window_bounds = array<i64: 8, 128>}, {transform_indices = @transform_1, window_bounds = array<i64: 128, 128>}, {transform_indices = @transform_2, window_bounds = array<i64: 128, 1>}, {transform_indices = @transform_3, window_bounds = array<i64: 128, 1>}, {transform_indices = @transform_4, window_bounds = array<i64: 8, 128>}, {pipeline_mode = #tpu.pipeline_mode<synchronous>, transform_indices = @transform_5, window_bounds = array<i64: 8, 128>}, {pipeline_mode = #tpu.pipeline_mode<synchronous>, transform_indices = @transform_6, window_bounds = array<i64: 8, 128>}, {pipeline_mode = #tpu.pipeline_mode<synchronous>, transform_indices = @transform_7, window_bounds = array<i64: 8, 128>}]} {
    %c0_i32 = arith.constant 0 : i32
    %0 = arith.cmpi eq, %arg0, %c0_i32 : i32
    %1 = arith.extui %0 : i1 to i32
    %c0_i32_0 = arith.constant 0 : i32
    %2 = arith.cmpi ne, %1, %c0_i32_0 : i32
    scf.if %2 {
      %cst_32 = arith.constant 0.000000e+00 : f32
      %48 = vector.broadcast %cst_32 : f32 to vector<8x128xf32>
      %c0_33 = arith.constant 0 : index
      %c0_34 = arith.constant 0 : index
      %49 = vector.load %arg6[%c0_33, %c0_34] : memref<8x128xf32, #tpu.memory_space<vmem>>, vector<8x128xf32>
      tpu.vector_store %arg6[%c0_33, %c0_34], %48 {strides = array<i32>} : memref<8x128xf32, #tpu.memory_space<vmem>>, vector<8x128xf32>,
      %cst_35 = arith.constant 0.000000e+00 : f32
      %50 = vector.broadcast %cst_35 : f32 to vector<8x128xf32>
      %c0_36 = arith.constant 0 : index
      %c0_37 = arith.constant 0 : index
      %51 = vector.load %arg7[%c0_36, %c0_37] : memref<8x128xf32, #tpu.memory_space<vmem>>, vector<8x128xf32>
      tpu.vector_store %arg7[%c0_36, %c0_37], %50 {strides = array<i32>} : memref<8x128xf32, #tpu.memory_space<vmem>>, vector<8x128xf32>,
      %cst_38 = arith.constant 0.000000e+00 : f32
      %52 = vector.broadcast %cst_38 : f32 to vector<8x128xf32>
      %c0_39 = arith.constant 0 : index
      %c0_40 = arith.constant 0 : index
      %53 = vector.load %arg8[%c0_39, %c0_40] : memref<8x128xf32, #tpu.memory_space<vmem>>, vector<8x128xf32>
      tpu.vector_store %arg8[%c0_39, %c0_40], %52 {strides = array<i32>} : memref<8x128xf32, #tpu.memory_space<vmem>>, vector<8x128xf32>,
    } else {
    }
    %c0 = arith.constant 0 : index
    %c0_1 = arith.constant 0 : index
    %3 = vector.load %arg1[%c0, %c0_1] : memref<8x128xbf16, #tpu.memory_space<vmem>>, vector<8x128xbf16>
    %c0_2 = arith.constant 0 : index
    %c0_3 = arith.constant 0 : index
    %4 = vector.load %arg2[%c0_2, %c0_3] : memref<128x128xbf16, #tpu.memory_space<vmem>>, vector<128x128xbf16>
    %cst = arith.constant dense<0.000000e+00> : vector<8x128xf32>
    %5 = tpu.matmul %3, %4, %cst {dimension_numbers = #tpu.dot_dimension_numbers<[1], [1], [0], [0], [0, 0, 1, 0], [], []>} : vector<8x128xbf16>, vector<128x128xbf16>, vector<8x128xf32> -> vector<8x128xf32>
    %c0_4 = arith.constant 0 : index
    %c0_5 = arith.constant 0 : index
    %6 = vector.load %arg5[%c0_4, %c0_5] : memref<8x128xf32, #tpu.memory_space<vmem>>, vector<8x128xf32>
    tpu.vector_store %arg5[%c0_4, %c0_5], %5 {strides = array<i32>} : memref<8x128xf32, #tpu.memory_space<vmem>>, vector<8x128xf32>,
    %c0_6 = arith.constant 0 : index
    %c0_7 = arith.constant 0 : index
    %7 = vector.load %arg3[%c0_6, %c0_7] : memref<128x1xi32, #tpu.memory_space<vmem>>, vector<128x1xi32>
    %c0_8 = arith.constant 0 : index
    %c0_9 = arith.constant 0 : index
    %8 = vector.load %arg4[%c0_8, %c0_9] : memref<128x1xi32, #tpu.memory_space<vmem>>, vector<128x1xi32>
    %9 = arith.truncf %5 : vector<8x128xf32> to vector<8x128xbf16>
    %10 = tpu.iota {dimensions = array<i32: 1>} : vector<128x128xi32>
    %11 = vector.broadcast %7 : vector<128x1xi32> to vector<128x128xi32>
    %12 = arith.cmpi eq, %11, %10 : vector<128x128xi32>
    %cst_10 = arith.constant 1.000000e+00 : f32
    %cst_11 = arith.constant 0.000000e+00 : f32
    %13 = vector.broadcast %cst_10 : f32 to vector<128x128xf32>
    %14 = vector.broadcast %cst_11 : f32 to vector<128x128xf32>
    %15 = arith.select %12, %13, %14 : vector<128x128xi1>, vector<128x128xf32>
    %16 = arith.truncf %15 : vector<128x128xf32> to vector<128x128xbf16>
    %c0_12 = arith.constant 0 : index
    %c0_13 = arith.constant 0 : index
    %17 = vector.load %arg6[%c0_12, %c0_13] : memref<8x128xf32, #tpu.memory_space<vmem>>, vector<8x128xf32>
    %cst_14 = arith.constant dense<0.000000e+00> : vector<8x128xf32>
    %18 = tpu.matmul %9, %16, %cst_14 {dimension_numbers = #tpu.dot_dimension_numbers<[1], [0], [0], [1], [0, 0, 1, 1], [], []>} : vector<8x128xbf16>, vector<128x128xbf16>, vector<8x128xf32> -> vector<8x128xf32>
    %19 = arith.addf %17, %18 : vector<8x128xf32>
    %c0_15 = arith.constant 0 : index
    %c0_16 = arith.constant 0 : index
    %20 = vector.load %arg6[%c0_15, %c0_16] : memref<8x128xf32, #tpu.memory_space<vmem>>, vector<8x128xf32>
    tpu.vector_store %arg6[%c0_15, %c0_16], %19 {strides = array<i32>} : memref<8x128xf32, #tpu.memory_space<vmem>>, vector<8x128xf32>,
    %21 = tpu.iota {dimensions = array<i32: 1>} : vector<128x128xi32>
    %22 = vector.broadcast %8 : vector<128x1xi32> to vector<128x128xi32>
    %23 = arith.cmpi eq, %22, %21 : vector<128x128xi32>
    %cst_17 = arith.constant 1.000000e+00 : f32
    %cst_18 = arith.constant 0.000000e+00 : f32
    %24 = vector.broadcast %cst_17 : f32 to vector<128x128xf32>
    %25 = vector.broadcast %cst_18 : f32 to vector<128x128xf32>
    %26 = arith.select %23, %24, %25 : vector<128x128xi1>, vector<128x128xf32>
    %c5_i32 = arith.constant 5 : i32
    %27 = vector.broadcast %c5_i32 : i32 to vector<128x1xi32>
    %28 = arith.cmpi sge, %7, %27 : vector<128x1xi32>
    %cst_19 = arith.constant 1.000000e+00 : f32
    %cst_20 = arith.constant 0.000000e+00 : f32
    %29 = vector.broadcast %cst_19 : f32 to vector<128x1xf32>
    %30 = vector.broadcast %cst_20 : f32 to vector<128x1xf32>
    %31 = arith.select %28, %29, %30 : vector<128x1xi1>, vector<128x1xf32>
    %32 = vector.broadcast %31 : vector<128x1xf32> to vector<128x128xf32>
    %33 = arith.mulf %26, %32 : vector<128x128xf32>
    %34 = arith.truncf %33 : vector<128x128xf32> to vector<128x128xbf16>
    %cst_21 = arith.constant 1.000000e+00 : f32
    %35 = vector.broadcast %cst_21 : f32 to vector<128x1xf32>
    %36 = arith.subf %35, %31 : vector<128x1xf32>
    %37 = vector.broadcast %36 : vector<128x1xf32> to vector<128x128xf32>
    %38 = arith.mulf %26, %37 : vector<128x128xf32>
    %39 = arith.truncf %38 : vector<128x128xf32> to vector<128x128xbf16>
    %c0_22 = arith.constant 0 : index
    %c0_23 = arith.constant 0 : index
    %40 = vector.load %arg7[%c0_22, %c0_23] : memref<8x128xf32, #tpu.memory_space<vmem>>, vector<8x128xf32>
    %cst_24 = arith.constant dense<0.000000e+00> : vector<8x128xf32>
    %41 = tpu.matmul %9, %34, %cst_24 {dimension_numbers = #tpu.dot_dimension_numbers<[1], [0], [0], [1], [0, 0, 1, 1], [], []>} : vector<8x128xbf16>, vector<128x128xbf16>, vector<8x128xf32> -> vector<8x128xf32>
    %42 = arith.addf %40, %41 : vector<8x128xf32>
    %c0_25 = arith.constant 0 : index
    %c0_26 = arith.constant 0 : index
    %43 = vector.load %arg7[%c0_25, %c0_26] : memref<8x128xf32, #tpu.memory_space<vmem>>, vector<8x128xf32>
    tpu.vector_store %arg7[%c0_25, %c0_26], %42 {strides = array<i32>} : memref<8x128xf32, #tpu.memory_space<vmem>>, vector<8x128xf32>,
    %c0_27 = arith.constant 0 : index
    %c0_28 = arith.constant 0 : index
    %44 = vector.load %arg8[%c0_27, %c0_28] : memref<8x128xf32, #tpu.memory_space<vmem>>, vector<8x128xf32>
    %cst_29 = arith.constant dense<0.000000e+00> : vector<8x128xf32>
    %45 = tpu.matmul %9, %39, %cst_29 {dimension_numbers = #tpu.dot_dimension_numbers<[1], [0], [0], [1], [0, 0, 1, 1], [], []>} : vector<8x128xbf16>, vector<128x128xbf16>, vector<8x128xf32> -> vector<8x128xf32>
    %46 = arith.addf %44, %45 : vector<8x128xf32>
    %c0_30 = arith.constant 0 : index
    %c0_31 = arith.constant 0 : index
    %47 = vector.load %arg8[%c0_30, %c0_31] : memref<8x128xf32, #tpu.memory_space<vmem>>, vector<8x128xf32>
    tpu.vector_store %arg8[%c0_30, %c0_31], %46 {strides = array<i32>} : memref<8x128xf32, #tpu.memory_space<vmem>>, vector<8x128xf32>,
    return
  }
  func.func @transform_0(%arg0: i32) -> (i32, i32) {
    %c0_i32 = arith.constant 0 : i32
    %c0_i32_0 = arith.constant 0 : i32
    %c0_i32_1 = arith.constant 0 : i32
    return %c0_i32, %c0_i32_0 : i32, i32
  }
  func.func @transform_1(%arg0: i32) -> (i32, i32) {
    %c0_i32 = arith.constant 0 : i32
    %c0_i32_0 = arith.constant 0 : i32
    return %arg0, %c0_i32 : i32, i32
  }
  func.func @transform_2(%arg0: i32) -> (i32, i32) {
    %c0_i32 = arith.constant 0 : i32
    %c0_i32_0 = arith.constant 0 : i32
    return %arg0, %c0_i32 : i32, i32
  }
  func.func @transform_3(%arg0: i32) -> (i32, i32) {
    %c0_i32 = arith.constant 0 : i32
    %c0_i32_0 = arith.constant 0 : i32
    return %arg0, %c0_i32 : i32, i32
  }
  func.func @transform_4(%arg0: i32) -> (i32, i32) {
    %c0_i32 = arith.constant 0 : i32
    %c0_i32_0 = arith.constant 0 : i32
    return %c0_i32, %arg0 : i32, i32
  }
  func.func @transform_5(%arg0: i32) -> (i32, i32) {
    %c0_i32 = arith.constant 0 : i32
    %c0_i32_0 = arith.constant 0 : i32
    %c0_i32_1 = arith.constant 0 : i32
    return %c0_i32, %c0_i32_0 : i32, i32
  }
  func.func @transform_6(%arg0: i32) -> (i32, i32) {
    %c0_i32 = arith.constant 0 : i32
    %c0_i32_0 = arith.constant 0 : i32
    %c0_i32_1 = arith.constant 0 : i32
    return %c0_i32, %c0_i32_0 : i32, i32
  }
  func.func @transform_7(%arg0: i32) -> (i32, i32) {
    %c0_i32 = arith.constant 0 : i32
    %c0_i32_0 = arith.constant 0 : i32
    %c0_i32_1 = arith.constant 0 : i32
    return %c0_i32, %c0_i32_0 : i32, i32
  }
}

</mosaic_0001>

<bundles_post_ra>
// kernel: tpu_custom_call.1
= control target key start
LH: loop header
LB: loop body
LE: loop exit
PB: predicated region body
PF: predicated region fallthrough
CT: control target
= control target key end

     0   :  { %13 = vsyncpa [#allocation3], 0  ;;  %s1251_s0 = inlined_call_operand.vmem [shape: bf16[8,128], index: 0, kind: input, shape index: {}]   ;;  %s1252_s1 = inlined_call_operand.vmem [shape: bf16[128,128], index: 1, kind: input, shape index: {}]   ;;  %s1253_s2 = inlined_call_operand.vmem [shape: s32[128,1], index: 2, kind: input, shape index: {}]   ;;  %s1254_s3 = inlined_call_operand.vmem [shape: s32[128,1], index: 3, kind: input, shape index: {}]   ;;  %s1255_s4 = inlined_call_operand.hbm [shape: f32[8,128], index: 4, kind: output, shape index: {0}]   ;;  %s1256_s5 = inlined_call_operand.hbm [shape: f32[8,128], index: 5, kind: output, shape index: {1}]   ;;  %s1257_s6 = inlined_call_operand.hbm [shape: f32[8,128], index: 6, kind: output, shape index: {2}]   ;;  %s1258_s7 = inlined_call_operand.hbm [shape: f32[8,128], index: 7, kind: output, shape index: {3}]  }
   0x1   :  { %14 = vsyncpa [#allocation5], 0  ;;  %v938_v0 = vld [vmem:[%s1253_s2 + $0x20] sm:$0xff]  ;;  %v943_v1 = vld [vmem:[%s1253_s2 + $0x10] sm:$0xff]  ;;  %v888_v3 = vmov 0  }
   0x2   :  { %v948_v2 = vld [vmem:[%s1253_s2] sm:$0xff]  ;;  %745 = vset.pattern.permute.xlu2 %v888_v3  ;;  %744 = vset.pattern.permute.xlu1 %v888_v3  ;;  %v956_v4 = vld [vmem:[%s1253_s2 + $0x28] sm:$0xff] }
   0x3   :  { %743 = vset.pattern.permute.xlu0 %v888_v3  ;;  %158 = vperm.xlu2 %745, %v938_v0  }
   0x4   :  { %152 = vperm.xlu1 %744, %v943_v1   ;;  %146 = vperm.xlu0 %743, %v948_v2  }
   0x5   :  { %15 = vsyncpa [#allocation8], 0  ;;  %v961_v5 = vld [vmem:[%s1253_s2 + $0x18] sm:$0xff]  ;;  %v966_v6 = vld [vmem:[%s1253_s2 + $0x8] sm:$0xff]  ;;  %v889_v29 = vmov 0.0   ;;  %vm333_vm10 = vcmp.ge.s32.totalorder %v938_v0, 5  ;;  %v143_v62 = vlaneseq }
   0x6   :  { %v118_v7 = vld [vmem:[%s1253_s2 + $0x40] sm:$0xff]  ;;  %v977_v8 = vld [vmem:[%s1253_s2 + $0x38] sm:$0xff]  ;;  %v982_v9 = vld [vmem:[%s1253_s2 + $0x30] sm:$0xff]  ;;  %vm334_vm11 = vcmp.ge.s32.totalorder %v956_v4, 5  ;;  %v349_v55 = vsel %vm333_vm10, 1.0, %v889_v29  ;;  %vm331_vm12 = vcmp.ge.s32.totalorder %v943_v1, 5 }
   0x7   :  { %v121_v10 = vld [vmem:[%s1253_s2 + $0x58] sm:$0xff]  ;;  %v120_v11 = vld [vmem:[%s1253_s2 + $0x50] sm:$0xff]  ;;  %v119_v12 = vld [vmem:[%s1253_s2 + $0x48] sm:$0xff]  ;;  %vm337_vm2 = vcmp.ge.s32.totalorder %v118_v7, 5  ;;  %vm336_vm6 = vcmp.ge.s32.totalorder %v977_v8, 5  ;;  %vm335_vm7 = vcmp.ge.s32.totalorder %v982_v9, 5 }
   0x8   :  { %v124_v13 = vld [vmem:[%s1253_s2 + $0x70] sm:$0xff]  ;;  %v1001_v14 = vld [vmem:[%s1253_s2 + $0x68] sm:$0xff]  ;;  %v1006_v15 = vld [vmem:[%s1253_s2 + $0x60] sm:$0xff]  ;;  %vm340_vm0 = vcmp.ge.s32.totalorder %v121_v10, 5  ;;  %vm339_vm1 = vcmp.ge.s32.totalorder %v120_v11, 5  ;;  %vm338_vm3 = vcmp.ge.s32.totalorder %v119_v12, 5 }
   0x9   :  { %v735_v16 = vld [vmem:[%s1252_s1 + $0x38] sm:$0xff]  ;;  %v127_v17 = vld [vmem:[%s1254_s3 + $0x8] sm:$0xff]  ;;  %v126_v18 = vld [vmem:[%s1254_s3] sm:$0xff]  ;;  %v1050_v30 = vsel %vm340_vm0, 1.0, %v889_v29  ;;  %v1053_v31 = vsel %vm339_vm1, 1.0, %v889_v29  ;;  %v1070_v37 = vsel %vm337_vm2, 1.0, %v889_v29 }
   0xa   :  { %96 = vmatpush.bf16.xpose.msra.mxu0 %v735_v16  ;;  %v125_v19 = vld [vmem:[%s1253_s2 + $0x78] sm:$0xff]  ;;  %v734_v20 = vld [vmem:[%s1252_s1 + $0x30] sm:$0xff]  ;;  %v130_v21 = vld [vmem:[%s1254_s3 + $0x20] sm:$0xff]  ;;  %v756_v35 = vpack.i.bf16 %v1050_v30, %v1053_v31  ;;  %v1073_v38 = vsel %vm338_vm3, 1.0, %v889_v29  ;;  %vm343_vm4 = vcmp.ge.s32.totalorder %v124_v13, 5  ;;  %v1094_v46 = vsel %vm336_vm6, 1.0, %v889_v29 }
   0xb   :  { %161 = vperm.xlu2 %745, %v956_v4   ;;  %v129_v22 = vld [vmem:[%s1254_s3 + $0x18] sm:$0xff]  ;;  %v128_v23 = vld [vmem:[%s1254_s3 + $0x10] sm:$0xff]  ;;  %v733_v24 = vld [vmem:[%s1252_s1 + $0x28] sm:$0xff]  ;;  %vm344_vm5 = vcmp.ge.s32.totalorder %v125_v19, 5  ;;  %v761_v42 = vpack.i.bf16 %v1073_v38, %v1070_v37  ;;  %v359_v43 = vsel %vm343_vm4, 1.0, %v889_v29  ;;  %v1097_v47 = vsel %vm335_vm7, 1.0, %v889_v29 }
   0xc   :  { %155 = vperm.xlu1 %744, %v961_v5   ;;  %149 = vperm.xlu0 %743, %v966_v6   ;;  %v133_v25 = vld [vmem:[%s1254_s3 + $0x38] sm:$0xff]  ;;  %v132_v26 = vld [vmem:[%s1254_s3 + $0x30] sm:$0xff]  ;;  %v131_v27 = vld [vmem:[%s1254_s3 + $0x28] sm:$0xff]  ;;  %v360_v44 = vsel %vm344_vm5, 1.0, %v889_v29  ;;  %v479_v48 = vsub.f32 1.0, %v359_v43  ;;  %vm342_vm8 = vcmp.ge.s32.totalorder %v1001_v14, 5  ;;  %v766_v51 = vpack.i.bf16 %v1094_v46, %v1097_v47 }
   0xd   :  { %v732_v28 = vld [vmem:[%s1252_s1 + $0x20] sm:$0xff]  ;;  %v136_v32 = vld [vmem:[%s1254_s3 + $0x50] sm:$0xff]  ;;  %v135_v33 = vld [vmem:[%s1254_s3 + $0x48] sm:$0xff]  ;;  %v746_v49 = vpack.i.bf16 %v360_v44, %v359_v43  ;;  %vm341_vm9 = vcmp.ge.s32.totalorder %v1006_v15, 5  ;;  %v358_v52 = vsel %vm342_vm8, 1.0, %v889_v29  ;;  %v350_v56 = vsel %vm334_vm11, 1.0, %v889_v29 }
   0xe   :  { %v134_v34 = vld [vmem:[%s1254_s3 + $0x40] sm:$0xff]  ;;  %v731_v36 = vld [vmem:[%s1252_s1 + $0x18] sm:$0xff]  ;;  %v140_v39 = vld [vmem:[%s1254_s3 + $0x70] sm:$0xff]  ;;  %v357_v53 = vsel %vm341_vm9, 1.0, %v889_v29  ;;  %v480_v58 = vsub.f32 1.0, %v360_v44  ;;  %v771_v60 = vpack.i.bf16 %v350_v56, %v349_v55  ;;  %vm332_vm13 = vcmp.ge.s32.totalorder %v961_v5, 5 }
   0xf   :  { %v138_v40 = vld [vmem:[%s1254_s3 + $0x60] sm:$0xff]  ;;  %v137_v41 = vld [vmem:[%s1254_s3 + $0x58] sm:$0xff]  ;;  %v730_v45 = vld [vmem:[%s1252_s1 + $0x10] sm:$0xff]  ;;  %v751_v57 = vpack.i.bf16 %v358_v52, %v357_v53  ;;  %v347_v0 = vsel %vm331_vm12, 1.0, %v889_v29  ;;  %v348_v3 = vsel %vm332_vm13, 1.0, %v889_v29  ;;  %v478_v4 = vsub.f32 1.0, %v358_v52 }
  0x10   :  { %v141_v50 = vld [vmem:[%s1254_s3 + $0x78] sm:$0xff]  ;;  %v729_v54 = vld [vmem:[%s1252_s1 + $0x8] sm:$0xff]  ;;  %v728_v63 = vld [vmem:[%s1252_s1] sm:$0xff]  ;;  %vm329_vm15 = vcmp.ge.s32.totalorder %v948_v2, 5  ;;  %vm330_vm0 = vcmp.ge.s32.totalorder %v966_v6, 5  ;;  %v476_v2 = vsub.f32 1.0, %v1050_v30 }
  0x11   :  { %v139_v59 = vld [vmem:[%s1254_s3 + $0x68] sm:$0xff]  ;;  %v31_v5 = vld [vmem:[%s1251_s0] sm:$0xf]  ;;  %v475_v6 = vsub.f32 1.0, %v1053_v31  ;;  %v473_v16 = vsub.f32 1.0, %v1070_v37  ;;  %v467_v31 = vsub.f32 1.0, %v347_v0 }
  0x12   :  { %97 = vmatpush.bf16.xpose.msra.mxu0 %v734_v20  ;;  %v472_v20 = vsub.f32 1.0, %v1094_v46  ;;  %v890_v44 = vmov 1.0|1.0   ;;  %s891_s0 = smov [#allocation2]   ;;  %s624_s13 = sshll.u32 %s1255_s4, 4  ;;  %s625_s13 = int_to_ptr.hbm [resolvable:$true] %s624_s13 }
  0x13   :  { %170 = vperm.xlu2 %745, %v118_v7   ;;  %v477_v7 = vsub.f32 1.0, %v357_v53  ;;  %s622_s10 = sshll.u32 %s891_s0, 4  ;;  %s892_s14 = smov [#allocation4]   ;;  %s623_s10 = int_to_ptr.vmem [resolvable:$true] %s622_s10 }
  0x14   :  { %167 = vperm.xlu1 %744, %v977_v8   ;;  %164 = vperm.xlu0 %743, %v982_v9   ;;  %v1125_v8 = vand.u32 127, %v143_v62  ;;  %v776_v9 = vpack.i.bf16 %v348_v3, %v347_v0  ;;  %s633_s15 = sshll.u32 %s892_s14, 4  ;;  %s635_s18 = sshll.u32 %s1256_s5, 4  ;;  %s634_s15 = int_to_ptr.vmem [resolvable:$true] %s633_s15  ;;  %s636_s18 = int_to_ptr.hbm [resolvable:$true] %s635_s18 }
  0x15   :  { %s893_s19 = smov [#allocation6]   ;;  %s646_s4 = sshll.u32 %s1257_s6, 4  ;;  %s647_s4 = int_to_ptr.hbm [resolvable:$true] %s646_s4 }
  0x16   :  { %s644_s20 = sshll.u32 %s893_s19, 4  ;;  %s894_s23 = smov [#allocation7]   ;;  %s645_s20 = int_to_ptr.vmem [resolvable:$true] %s644_s20 }
  0x17   :  { %s655_s5 = sshll.u32 %s894_s23, 4  ;;  %s657_s25 = sshll.u32 %s1258_s7, 4  ;;  %s656_s5 = int_to_ptr.vmem [resolvable:$true] %s655_s5  ;;  %s658_s25 = int_to_ptr.hbm [resolvable:$true] %s657_s25 }
  0x1a   :  { %98 = vmatpush.bf16.xpose.msra.mxu0 %v733_v24 }
  0x1b   :  { %179 = vperm.xlu2 %745, %v121_v10  }
  0x1c   :  { %176 = vperm.xlu1 %744, %v120_v11   ;;  %173 = vperm.xlu0 %743, %v119_v12   ;;  %v345_v11 = vsel %vm329_vm15, 1.0, %v889_v29  ;;  %v346_v12 = vsel %vm330_vm0, 1.0, %v889_v29 }
  0x1d   :  { %v466_v37 = vsub.f32 1.0, %v346_v12 }
  0x22   :  { %99 = vmatpush.bf16.xpose.msra.mxu0 %v732_v28 }
  0x23   :  { %188 = vperm.xlu2 %745, %v124_v13   ;;  %v781_v13 = vpack.i.bf16 %v346_v12, %v345_v11 }
  0x24   :  { %185 = vperm.xlu1 %744, %v1001_v14   ;;  %182 = vperm.xlu0 %743, %v1006_v15   ;;  %v474_v15 = vsub.f32 1.0, %v1073_v38 }
  0x2a   :  { %100 = vmatpush.bf16.xpose.msra.mxu0 %v731_v36  ;;  %v465_v36 = vsub.f32 1.0, %v345_v11 }
  0x2b   :  { %253 = vperm.xlu2 %745, %v127_v17  }
  0x2c   :  { %250 = vperm.xlu1 %744, %v126_v18   ;;  %191 = vperm.xlu0 %743, %v125_v19  }
  0x32   :  { %101 = vmatpush.bf16.xpose.msra.mxu0 %v730_v45 }
  0x33   :  { %262 = vperm.xlu2 %745, %v130_v21   ;;  %v471_v21 = vsub.f32 1.0, %v1097_v47 }
  0x34   :  { %259 = vperm.xlu1 %744, %v129_v22   ;;  %256 = vperm.xlu0 %743, %v128_v23  }
  0x3a   :  { %102 = vmatpush.bf16.xpose.msra.mxu0 %v729_v54 }
  0x3b   :  { %271 = vperm.xlu2 %745, %v133_v25   ;;  %v469_v25 = vsub.f32 1.0, %v349_v55 }
  0x3c   :  { %268 = vperm.xlu1 %744, %v132_v26   ;;  %265 = vperm.xlu0 %743, %v131_v27   ;;  %v470_v26 = vsub.f32 1.0, %v350_v56 }
  0x42   :  { %103 = vmatpush.bf16.xpose.msra.mxu0 %v728_v63 }
  0x43   :  { %280 = vperm.xlu2 %745, %v136_v32   ;;  %v468_v32 = vsub.f32 1.0, %v348_v3 }
  0x44   :  { %277 = vperm.xlu1 %744, %v135_v33   ;;  %274 = vperm.xlu0 %743, %v134_v34  }
  0x49   :  { %104 = vmatmul.bf16.vlgmr.msra.gmra.mxu0 %v31_v5 }
  0x4b   :  { %292 = vperm.xlu2 %745, %v140_v39  }
  0x4c   :  { %286 = vperm.xlu1 %744, %v138_v40   ;;  %283 = vperm.xlu0 %743, %v137_v41  }
  0x53   :  { %553 = vperm.xlu2 %745, %v479_v48  }
  0x54   :  { %295 = vperm.xlu0 %743, %v141_v50   ;;  %747 = vperm.xlu1 %744, %v746_v49  }
  0x5b   :  { %752 = vperm.xlu2 %745, %v751_v57  }
  0x5c   :  { %558 = vperm.xlu0 %743, %v480_v58   ;;  %289 = vperm.xlu1 %744, %v139_v59  }
  0x5d   :  { %v159_v61 = vpop.permute.xlu2 %158 }
  0x5e   :  { %vm197_vm14 = vcmp.eq.s32.totalorder %v159_v61, %v1125_v8 }
  0x63   :  { %757 = vperm.xlu2 %745, %v756_v35  }
  0x64   :  { %548 = vperm.xlu1 %744, %v478_v4   ;;  %543 = vperm.xlu0 %743, %v477_v7  }
  0x65   :  { %v162_v1 = vpop.permute.xlu2 %161 }
  0x66   :  { %vm198_vm1 = vcmp.eq.s32.totalorder %v162_v1, %v1125_v8 }
  0x67   :  { %vm1134_vm2 = vmpackc.low %vm198_vm1, %vm197_vm14 }
  0x6b   :  { %762 = vperm.xlu2 %745, %v761_v42  }
  0x6c   :  { %538 = vperm.xlu1 %744, %v476_v2   ;;  %533 = vperm.xlu0 %743, %v475_v6  }
  0x6d   :  { %v171_v14 = vpop.permute.xlu2 %170 }
  0x6e   :  { %vm201_vm13 = vcmp.eq.s32.totalorder %v171_v14, %v1125_v8 }
  0x73   :  { %767 = vperm.xlu2 %745, %v766_v51  }
  0x74   :  { %528 = vperm.xlu1 %744, %v474_v15   ;;  %523 = vperm.xlu0 %743, %v473_v16  }
  0x75   :  { %v180_v17 = vpop.permute.xlu2 %179 }
  0x76   :  { %v1144_v18 = vpop.permute.xlu1 %152  ;;  %v1146_v19 = vpop.permute.xlu0 %146  ;;  %vm204_vm10 = vcmp.eq.s32.totalorder %v180_v17, %v1125_v8 }
  0x7b   :  { %772 = vperm.xlu2 %745, %v771_v60  }
  0x7c   :  { %518 = vperm.xlu1 %744, %v472_v20   ;;  %513 = vperm.xlu0 %743, %v471_v21  }
  0x7d   :  { %v189_v22 = vpop.permute.xlu2 %188 }
  0x7e   :  { %v156_v23 = vpop.permute.xlu1 %155  ;;  %v1150_v24 = vpop.permute.xlu0 %149  ;;  %vm207_vm3 = vcmp.eq.s32.totalorder %v189_v22, %v1125_v8 }
  0x83   :  { %777 = vperm.xlu2 %745, %v776_v9  }
  0x84   :  { %508 = vperm.xlu1 %744, %v470_v26   ;;  %503 = vperm.xlu0 %743, %v469_v25  }
  0x85   :  { %v1152_v27 = vpop.permute.xlu2 %253 }
  0x86   :  { %v168_v28 = vpop.permute.xlu1 %167  ;;  %v165_v30 = vpop.permute.xlu0 %164 }
  0x87   :  { %vm200_vm15 = vcmp.eq.s32.totalorder %v168_v28, %v1125_v8  ;;  %vm199_vm0 = vcmp.eq.s32.totalorder %v165_v30, %v1125_v8 }
  0x88   :  { %vm720_vm1 = vmpackc.low %vm200_vm15, %vm199_vm0 }
  0x8b   :  { %782 = vperm.xlu2 %745, %v781_v13  }
  0x8c   :  { %498 = vperm.xlu1 %744, %v468_v32   ;;  %493 = vperm.xlu0 %743, %v467_v31  }
  0x8d   :  { %v1154_v33 = vpop.permute.xlu2 %262 }
  0x8e   :  { %v177_v34 = vpop.permute.xlu1 %176  ;;  %v174_v35 = vpop.permute.xlu0 %173 }
  0x8f   :  { %vm203_vm9 = vcmp.eq.s32.totalorder %v177_v34, %v1125_v8  ;;  %vm202_vm12 = vcmp.eq.s32.totalorder %v174_v35, %v1125_v8 }
  0x90   :  { %vm716_vm11 = vmpackc.low %vm204_vm10, %vm203_vm9 }
  0x91   :  { %vm718_vm14 = vmpackc.low %vm202_vm12, %vm201_vm13 }
  0x94   :  { %488 = vperm.xlu1 %744, %v466_v37   ;;  %483 = vperm.xlu0 %743, %v465_v36  }
  0x95   :  { %v1156_v38 = vpop.permute.xlu2 %271 }
  0x96   :  { %v186_v39 = vpop.permute.xlu1 %185  ;;  %v183_v40 = vpop.permute.xlu0 %182  ;;  %vm304_vm0 = vcmp.eq.s32.totalorder %v1156_v38, %v1125_v8 }
  0x97   :  { %vm206_vm6 = vcmp.eq.s32.totalorder %v186_v39, %v1125_v8  ;;  %vm205_vm7 = vcmp.eq.s32.totalorder %v183_v40, %v1125_v8 }
  0x98   :  { %vm714_vm8 = vmpackc.low %vm206_vm6, %vm205_vm7  ;;  %vm194_vm6 = vcmp.eq.s32.totalorder %v1150_v24, %v1125_v8  ;;  %vm193_vm7 = vcmp.eq.s32.totalorder %v1146_v19, %v1125_v8 }
  0x9d   :  { %v1158_v41 = vpop.permute.xlu2 %280 }
  0x9e   :  { %v1160_v42 = vpop.permute.xlu1 %250  ;;  %v192_v43 = vpop.permute.xlu0 %191  ;;  %vm307_vm12 = vcmp.eq.s32.totalorder %v1158_v41, %v1125_v8  ;;  %v320_v41 = vsel %vm304_vm0, 1.0, %v889_v29 }
  0x9f   :  { %vm208_vm4 = vcmp.eq.s32.totalorder %v192_v43, %v1125_v8  ;;  %v323_v16 = vsel %vm307_vm12, 1.0, %v889_v29 }
  0xa0   :  { %vm712_vm5 = vmpackc.low %vm208_vm4, %vm207_vm3  ;;  %vm196_vm3 = vcmp.eq.s32.totalorder %v156_v23, %v1125_v8  ;;  %vm195_vm4 = vcmp.eq.s32.totalorder %v1144_v18, %v1125_v8 }
  0xa1   :  { %713 = vmatpush.bf16.msk.msra.mxu1 %vm712_vm5, %v890_v44  ;;  %vm724_vm5 = vmpackc.low %vm196_vm3, %vm195_vm4  ;;  %vm301_vm3 = vcmp.eq.s32.totalorder %v1154_v33, %v1125_v8 }
  0xa5   :  { %715 = vmatpush.bf16.msk.msra.mxu1 %vm714_vm8, %v890_v44  ;;  %v293_v45 = vpop.permute.xlu2 %292  ;;  %vm726_vm8 = vmpackc.low %vm194_vm6, %vm193_vm7  ;;  %vm298_vm7 = vcmp.eq.s32.totalorder %v1152_v27, %v1125_v8 }
  0xa6   :  { %v1167_v46 = vpop.permute.xlu1 %259  ;;  %v1169_v47 = vpop.permute.xlu0 %256 }
  0xa7   :  { %vm299_vm6 = vcmp.eq.s32.totalorder %v1169_v47, %v1125_v8 }
  0xa9   :  { %717 = vmatpush.bf16.msk.msra.mxu1 %vm716_vm11, %v890_v44 }
  0xad   :  { %719 = vmatpush.bf16.msk.msra.mxu1 %vm718_vm14, %v890_v44  ;;  %v554_v48 = vpop.permute.xlu2 %553 }
  0xae   :  { %v1176_v49 = vpop.permute.xlu1 %268  ;;  %v1178_v50 = vpop.permute.xlu0 %265 }
  0xaf   :  { %vm302_vm4 = vcmp.eq.s32.totalorder %v1178_v50, %v1125_v8 }
  0xb0   :  { %v318_v38 = vsel %vm302_vm4, 1.0, %v889_v29 }
  0xb1   :  { %721 = vmatpush.bf16.msk.msra.mxu1 %vm720_vm1, %v890_v44  ;;  %vm303_vm1 = vcmp.eq.s32.totalorder %v1176_v49, %v1125_v8 }
  0xb2   :  { %v319_v43 = vsel %vm303_vm1, 1.0, %v889_v29 }
  0xb5   :  { %723 = vmatpush.bf16.msk.msra.mxu1 %vm1134_vm2, %v890_v44  ;;  %v753_v51 = vpop.permute.xlu2 %752  ;;  %vm311_vm2 = vcmp.eq.s32.totalorder %v293_v45, %v1125_v8 }
  0xb6   :  { %v278_v52 = vpop.permute.xlu1 %277  ;;  %v275_v53 = vpop.permute.xlu0 %274  ;;  %v327_v62 = vsel %vm311_vm2, 1.0, %v889_v29  ;;  %v755_v1 = vunpack.i.h.bf16 %v753_v51  ;;  %v754_v6 = vunpack.i.l.bf16 %v753_v51 }
  0xb7   :  { %v575_v7 = vmul.f32 %v554_v48, %v327_v62  ;;  %vm306_vm14 = vcmp.eq.s32.totalorder %v278_v52, %v1125_v8  ;;  %vm305_vm15 = vcmp.eq.s32.totalorder %v275_v53, %v1125_v8  ;;  %v317_v53 = vsel %vm301_vm3, 1.0, %v889_v29 }
  0xb8   :  { %v322_v25 = vsel %vm306_vm14, 1.0, %v889_v29  ;;  %v321_v28 = vsel %vm305_vm15, 1.0, %v889_v29 }
  0xb9   :  { %725 = vmatpush.bf16.msk.msra.mxu1 %vm724_vm5, %v890_v44  ;;  %vm300_vm5 = vcmp.eq.s32.totalorder %v1167_v46, %v1125_v8  ;;  %v314_v46 = vsel %vm298_vm7, 1.0, %v889_v29 }
  0xbd   :  { %727 = vmatpush.bf16.msk.msra.mxu1 %vm726_vm8, %v890_v44  ;;  %v758_v54 = vpop.permute.xlu2 %757  ;;  %vm297_vm8 = vcmp.eq.s32.totalorder %v1160_v42, %v1125_v8 }
  0xbe   :  { %v287_v55 = vpop.permute.xlu1 %286  ;;  %v284_v56 = vpop.permute.xlu0 %283  ;;  %v760_v10 = vunpack.i.h.bf16 %v758_v54  ;;  %v759_v11 = vunpack.i.l.bf16 %v758_v54  ;;  %v313_v27 = vsel %vm297_vm8, 1.0, %v889_v29 }
  0xbf   :  { %vm309_vm10 = vcmp.eq.s32.totalorder %v287_v55, %v1125_v8  ;;  %vm308_vm11 = vcmp.eq.s32.totalorder %v284_v56, %v1125_v8 }
  0xc0   :  { %v325_v5 = vsel %vm309_vm10, 1.0, %v889_v29  ;;  %v324_v13 = vsel %vm308_vm11, 1.0, %v889_v29  ;;  %v451_v20 = vmul.f32 %v759_v11, %v323_v16 }
  0xc1   :  { %v453_v17 = vmul.f32 %v754_v6, %v325_v5  ;;  %v452_v21 = vmul.f32 %v760_v10, %v324_v13 }
  0xc3   :  { %v462_v35 = vpack.c.bf16 %v452_v21, %v451_v20 }
  0xc5   :  { %v763_v57 = vpop.permute.xlu2 %762 }
  0xc6   :  { %v296_v58 = vpop.permute.xlu0 %295  ;;  %v748_v59 = vpop.permute.xlu1 %747  ;;  %v765_v22 = vunpack.i.h.bf16 %v763_v57  ;;  %v764_v23 = vunpack.i.l.bf16 %v763_v57 }
  0xc7   :  { %vm312_vm9 = vcmp.eq.s32.totalorder %v296_v58, %v1125_v8  ;;  %v750_v60 = vunpack.i.h.bf16 %v748_v59  ;;  %v749_v61 = vunpack.i.l.bf16 %v748_v59 }
  0xc8   :  { %v328_v63 = vsel %vm312_vm9, 1.0, %v889_v29  ;;  %v449_v39 = vmul.f32 %v764_v23, %v321_v28  ;;  %v450_v40 = vmul.f32 %v765_v22, %v322_v25 }
  0xc9   :  { %v455_v0 = vmul.f32 %v749_v61, %v327_v62  ;;  %v456_v3 = vmul.f32 %v750_v60, %v328_v63 }
  0xca   :  { %v461_v33 = vpack.c.bf16 %v450_v40, %v449_v39 }
  0xcb   :  { %v464_v4 = vpack.c.bf16 %v456_v3, %v455_v0  ;;  %v315_v0 = vsel %vm299_vm6, 1.0, %v889_v29 }
  0xcd   :  { %586 = vmatpush.bf16.msra.mxu2 %v464_v4  ;;  %v768_v9 = vpop.permute.xlu2 %767 }
  0xce   :  { %v559_v12 = vpop.permute.xlu0 %558  ;;  %v290_v2 = vpop.permute.xlu1 %289  ;;  %v770_v30 = vunpack.i.h.bf16 %v768_v9  ;;  %v769_v31 = vunpack.i.l.bf16 %v768_v9 }
  0xcf   :  { %v576_v14 = vmul.f32 %v559_v12, %v328_v63  ;;  %vm310_vm13 = vcmp.eq.s32.totalorder %v290_v2, %v1125_v8  ;;  %v316_v63 = vsel %vm300_vm5, 1.0, %v889_v29 }
  0xd0   :  { %v326_v15 = vsel %vm310_vm13, 1.0, %v889_v29  ;;  %v447_v51 = vmul.f32 %v769_v31, %v319_v43  ;;  %v448_v52 = vmul.f32 %v770_v30, %v320_v41 }
  0xd1   :  { %v454_v18 = vmul.f32 %v755_v1, %v326_v15  ;;  %v584_v19 = vpack.c.bf16 %v576_v14, %v575_v7  ;;  %v105_v7 = vpop.f32.mrf.mxu0 }
  0xd2   :  { %v460_v55 = vpack.c.bf16 %v448_v52, %v447_v51  ;;  %v142_v1 = vpack.c.bf16 %v105_v7, %v105_v7  ;;  %109 = vst [vmem:[#allocation2] sm:$0xff] %v105_v7 }
  0xd3   :  { %602 = vmatpush.bf16.msra.mxu3 %v584_v19  ;;  %v463_v24 = vpack.c.bf16 %v454_v18, %v453_v17  ;;  %627 = dma.vmem_to_hbm [thread:$0]  %s623_s10, 128, %s625_s13, [#allocation3]  }
  0xd4   :  { %242 = vmatmul.bf16.vlgmr.msra.gmra.mxu1 %v142_v1 }
  0xd5   :  { %587 = vmatpush.bf16.msra.mxu2 %v463_v24  ;;  %v773_v26 = vpop.permute.xlu2 %772 }
  0xd6   :  { %v549_v32 = vpop.permute.xlu1 %548  ;;  %v544_v34 = vpop.permute.xlu0 %543  ;;  %v775_v45 = vunpack.i.h.bf16 %v773_v26  ;;  %v774_v48 = vunpack.i.l.bf16 %v773_v26 }
  0xd7   :  { %v574_v36 = vmul.f32 %v549_v32, %v326_v15  ;;  %v573_v37 = vmul.f32 %v544_v34, %v325_v5 }
  0xd8   :  { %v445_v56 = vmul.f32 %v774_v48, %v317_v53  ;;  %v446_v57 = vmul.f32 %v775_v45, %v318_v38 }
  0xd9   :  { %588 = vmatpush.bf16.msra.mxu2 %v462_v35  ;;  %v583_v44 = vpack.c.bf16 %v574_v36, %v573_v37 }
  0xda   :  { %v459_v47 = vpack.c.bf16 %v446_v57, %v445_v56 }
  0xdb   :  { %603 = vmatpush.bf16.msra.mxu3 %v583_v44 }
  0xdd   :  { %589 = vmatpush.bf16.msra.mxu2 %v461_v33  ;;  %v778_v49 = vpop.permute.xlu2 %777 }
  0xde   :  { %v539_v50 = vpop.permute.xlu1 %538  ;;  %v534_v54 = vpop.permute.xlu0 %533  ;;  %v780_v60 = vunpack.i.h.bf16 %v778_v49  ;;  %v779_v61 = vunpack.i.l.bf16 %v778_v49 }
  0xdf   :  { %v572_v58 = vmul.f32 %v539_v50, %v324_v13  ;;  %v571_v59 = vmul.f32 %v534_v54, %v323_v16  ;;  %v107_v16 = vpop.f32.mrf.mxu0 }
  0xe0   :  { %v443_v3 = vmul.f32 %v779_v61, %v315_v0  ;;  %v444_v4 = vmul.f32 %v780_v60, %v316_v63 }
  0xe1   :  { %590 = vmatpush.bf16.msra.mxu2 %v460_v55  ;;  %v582_v62 = vpack.c.bf16 %v572_v58, %v571_v59 }
  0xe2   :  { %v458_v13 = vpack.c.bf16 %v444_v4, %v443_v3 }
  0xe3   :  { %604 = vmatpush.bf16.msra.mxu3 %v582_v62 }
  0xe5   :  { %591 = vmatpush.bf16.msra.mxu2 %v459_v47  ;;  %v783_v9 = vpop.permute.xlu2 %782 }
  0xe6   :  { %v529_v5 = vpop.permute.xlu1 %528  ;;  %v524_v10 = vpop.permute.xlu0 %523  ;;  %v785_v11 = vunpack.i.h.bf16 %v783_v9  ;;  %v784_v12 = vunpack.i.l.bf16 %v783_v9 }
  0xe7   :  { %v570_v2 = vmul.f32 %v529_v5, %v322_v25  ;;  %v569_v6 = vmul.f32 %v524_v10, %v321_v28 }
  0xe8   :  { %v441_v14 = vmul.f32 %v784_v12, %v313_v27  ;;  %v442_v15 = vmul.f32 %v785_v11, %v314_v46 }
  0xe9   :  { %592 = vmatpush.bf16.msra.mxu2 %v458_v13  ;;  %v581_v8 = vpack.c.bf16 %v570_v2, %v569_v6 }
  0xea   :  { %v457_v42 = vpack.c.bf16 %v442_v15, %v441_v14 }
  0xeb   :  { %605 = vmatpush.bf16.msra.mxu3 %v581_v8 }
  0xed   :  { %593 = vmatpush.bf16.msra.mxu2 %v457_v42 }
  0xee   :  { %v519_v17 = vpop.permute.xlu1 %518  ;;  %v514_v18 = vpop.permute.xlu0 %513 }
  0xef   :  { %v568_v19 = vmul.f32 %v519_v17, %v320_v41  ;;  %v567_v20 = vmul.f32 %v514_v18, %v319_v43 }
  0xf0   :  { %594 = vmatmul.bf16.vlgmr.msra.gmra.mxu2 %v142_v1 }
  0xf1   :  { %v580_v21 = vpack.c.bf16 %v568_v19, %v567_v20 }
  0xf3   :  { %606 = vmatpush.bf16.msra.mxu3 %v580_v21 }
  0xf6   :  { %v509_v29 = vpop.permute.xlu1 %508  ;;  %v504_v22 = vpop.permute.xlu0 %503 }
  0xf7   :  { %v566_v23 = vmul.f32 %v509_v29, %v318_v38  ;;  %v565_v24 = vmul.f32 %v504_v22, %v317_v53 }
  0xf9   :  { %v579_v25 = vpack.c.bf16 %v566_v23, %v565_v24 }
  0xfb   :  { %607 = vmatpush.bf16.msra.mxu3 %v579_v25 }
  0xfe   :  { %v499_v26 = vpop.permute.xlu1 %498  ;;  %v494_v28 = vpop.permute.xlu0 %493 }
  0xff   :  { %v564_v30 = vmul.f32 %v499_v26, %v316_v63  ;;  %v563_v31 = vmul.f32 %v494_v28, %v315_v0 }
 0x101   :  { %v578_v32 = vpack.c.bf16 %v564_v30, %v563_v31 }
 0x103   :  { %608 = vmatpush.bf16.msra.mxu3 %v578_v32 }
 0x106   :  { %v489_v34 = vpop.permute.xlu1 %488  ;;  %v484_v35 = vpop.permute.xlu0 %483 }
 0x107   :  { %v562_v36 = vmul.f32 %v489_v34, %v314_v46  ;;  %v561_v37 = vmul.f32 %v484_v35, %v313_v27 }
 0x109   :  { %v577_v39 = vpack.c.bf16 %v562_v36, %v561_v37 }
 0x10b   :  { %609 = vmatpush.bf16.msra.mxu3 %v577_v39 }
 0x10e   :  { %610 = vmatmul.bf16.vlgmr.msra.gmra.mxu3 %v142_v1 }
 0x151   :  { %v243_v40 = vpop.f32.mrf.mxu1 }
 0x152   :  { %248 = vst [vmem:[#allocation4] sm:$0xff] %v243_v40 }
 0x153   :  { %638 = dma.vmem_to_hbm [thread:$0]  %s634_s15, 128, %s636_s18, [#allocation5]  }
 0x159   :  { %v245_v41 = vpop.f32.mrf.mxu1 }
 0x173   :  { %v595_v43 = vpop.f32.mrf.mxu2 }
 0x174   :  { %600 = vst [vmem:[#allocation6] sm:$0xff] %v595_v43 }
 0x175   :  { %649 = dma.vmem_to_hbm [thread:$0]  %s645_s20, 128, %s647_s4, [#allocation5]  }
 0x17b   :  { %v597_v44 = vpop.f32.mrf.mxu2 }
 0x191   :  { %v611_v45 = vpop.f32.mrf.mxu3 }
 0x192   :  { %616 = vst [vmem:[#allocation7] sm:$0xff] %v611_v45 }
 0x193   :  { %660 = dma.vmem_to_hbm [thread:$0]  %s656_s5, 128, %s658_s25, [#allocation8]  }
 0x199   :  { %v613_v48 = vpop.f32.mrf.mxu3 }
 0x19a   :  { %882 = dma.done.wait [#allocation3], 128  }
 0x19b   :  { %883 = vsyncadd [#allocation3], 4294967168 }
 0x19c   :  { %884 = dma.done.wait [#allocation5], 256  }
 0x19d   :  { %885 = vsyncadd [#allocation5], 4294967040 }
 0x19e   :  { %886 = dma.done.wait [#allocation8], 128  }
 0x19f   :  { %887 = vsyncadd [#allocation8], 4294967168 }
 0x1a0   :  { %677 = vsyncpa [#allocation3], 1 }
 0x1a1   :  { %678 = vsyncpa [#allocation5], 1 }
 0x1a2   :  { %679 = vsyncpa [#allocation8], 1 }

</bundles_post_ra>
